<compile_context>
chip_gen: v7x
topology: tpu7x:2x2x1
jax: 0.10.0
libtpu: 0.0.40
codegen_flags: <defaults>
</compile_context>

<pallas_src>
import math

import jax
import jax.numpy as jnp
from jax.experimental import pallas as pl
from jax.experimental.pallas import tpu as pltpu

_INV_SQRT2 = 0.7071067811865476


def _gelu_exact(y):
    # torch.nn.GELU() default (approximate='none'): 0.5*y*(1+erf(y/sqrt(2))).
    # Kept exact; a tanh/sigmoid approximation would move work to the EUP slot
    # but changes numerics vs torch, so it is intentionally not used here.
    return 0.5 * y * (1.0 + jax.lax.erf(y * _INV_SQRT2))


def _linear_gelu_bias_kernel(x_ref, w_ref, b_ref, o_ref):
    # Native-dtype MXU operands, f32 accumulate + f32 epilogue.
    y = jnp.dot(x_ref[...], w_ref[...], preferred_element_type=jnp.float32)
    y = y + b_ref[...].astype(jnp.float32)
    o_ref[...] = _gelu_exact(y).astype(o_ref.dtype)


def _linear_gelu_nobias_kernel(x_ref, w_ref, o_ref):
    # Specialized bias=False path: no zero-bias DMA, no extra VPU add.
    y = jnp.dot(x_ref[...], w_ref[...], preferred_element_type=jnp.float32)
    o_ref[...] = _gelu_exact(y).astype(o_ref.dtype)


def _round_up(v, m):
    return ((v + m - 1) // m) * m


def _vmem_budget_bytes():
    """(tile working-set budget, vmem_limit_bytes), sized per TPU generation."""
    cap = None
    try:
        info = pltpu.get_tpu_info()
        cap = getattr(info, "vmem_capacity_bytes", None)
    except Exception:
        cap = None
    if cap is None:
        cap = 64 * 1024 * 1024  # conservative (v7x-sized) default
    if cap >= 100 * 1024 * 1024:           # v5e / v6e: 128 MiB physical VMEM
        return 96 * 1024 * 1024, 100 * 1024 * 1024
    else:                                   # v7x: 64 MiB physical VMEM
        return 32 * 1024 * 1024, 40 * 1024 * 1024


def _pick_block_rows(n_rows, kp, dp, itemsize, budget):
    # Per-row VMEM working set (lane / minor dims pad to multiples of 128):
    #   x tile    : 2 (double buffer) * padded(kp) * itemsize
    #   out tile  : 2 (double buffer) * padded(dp) * itemsize
    #   epilogue  : ~1 f32 full-tile intermediate (matmul result before GELU)
    # Weight / bias tiles are tiny and ignored.
    kp_pad = _round_up(kp, 128)
    dp_pad = _round_up(dp, 128)
    per_row = 2 * kp_pad * itemsize + 2 * dp_pad * itemsize + dp_pad * 4
    bm = budget // max(per_row, 1)
    bm = max(8, (bm // 8) * 8)
    # Keep >= ~4 grid steps when there is enough data: lets v7x shard the
    # "parallel" row axis over its 2 TensorCores and keeps the DMA pipeline
    # busy (costs ~1 us total on single-core parts; negligible).
    bm = min(bm, max(8, _round_up(pl.cdiv(n_rows, 4), 8)))
    # Never larger than the data itself.
    bm = min(bm, max(8, _round_up(n_rows, 8)))
    return int(bm)


@jax.jit
def linear_projection(x, weight, bias=None):
    """y = GELU(x @ weight.T + bias); weight in torch nn.Linear layout (D_out, K)."""
    orig_shape = x.shape
    k = orig_shape[-1]
    d = weight.shape[0]
    assert weight.shape[1] == k, "weight must be (n_embd, in_features)"

    x2 = x.reshape(-1, k)
    n = x2.shape[0]
    w_t = weight.T  # (K, D): output dim is lane-dense

    # Lane-dense output packing: pack G = 128 // D row-groups per output row
    # (block-diagonal weight) so output stores use all 128 lanes.
    if d < 128 and (128 % d) == 0:
        g = 128 // d
    else:
        g = 1

    if g > 1:
        pad = (-n) % g
        if pad:
            x2 = jnp.pad(x2, ((0, pad), (0, 0)))
        n_rows = (n + pad) // g
        xk = x2.reshape(n_rows, k * g)                         # (N/G, K*G)
        wk = jnp.kron(jnp.eye(g, dtype=w_t.dtype), w_t)        # (K*G, D*G) block-diag
        bk = None if bias is None else jnp.tile(bias, g).reshape(1, d * g)
        kp, dp = k * g, d * g
    else:
        n_rows, xk, wk = n, x2, w_t
        bk = None if bias is None else bias.reshape(1, d)
        kp, dp = k, d

    budget, vmem_limit = _vmem_budget_bytes()
    block_rows = _pick_block_rows(n_rows, kp, dp, x.dtype.itemsize, budget)
    grid = (pl.cdiv(n_rows, block_rows),)  # clipped last tile; no HBM pad copy

    cost = pl.CostEstimate(
        flops=2 * n * k * d + 8 * n * d,
        transcendentals=n * d,
        bytes_accessed=(n * k + n * d) * x.dtype.itemsize
        + (kp * dp + (dp if bias is not None else 0)) * weight.dtype.itemsize,
    )
    cparams = pltpu.CompilerParams(
        dimension_semantics=("parallel",),   # row axis shards over v7x's 2 TCs
        vmem_limit_bytes=vmem_limit,
    )

    x_spec = pl.BlockSpec((block_rows, kp), lambda i: (i, 0))
    w_spec = pl.BlockSpec((kp, dp), lambda i: (0, 0))
    o_spec = pl.BlockSpec((block_rows, dp), lambda i: (i, 0))

    if bk is None:
        out = pl.pallas_call(
            _linear_gelu_nobias_kernel,
            out_shape=jax.ShapeDtypeStruct((n_rows, dp), x.dtype),
            grid_spec=pltpu.PrefetchScalarGridSpec(
                num_scalar_prefetch=0,
                grid=grid,
                in_specs=[x_spec, w_spec],
                out_specs=o_spec,
            ),
            compiler_params=cparams,
            cost_estimate=cost,
        )(xk, wk)
    else:
        out = pl.pallas_call(
            _linear_gelu_bias_kernel,
            out_shape=jax.ShapeDtypeStruct((n_rows, dp), x.dtype),
            grid_spec=pltpu.PrefetchScalarGridSpec(
                num_scalar_prefetch=0,
                grid=grid,
                in_specs=[x_spec, w_spec, pl.BlockSpec((1, dp), lambda i: (0, 0))],
                out_specs=o_spec,
            ),
            compiler_params=cparams,
            cost_estimate=cost,
        )(xk, wk, bk)

    out = out.reshape(-1, d)[:n]           # undo packing / row padding
    return out.reshape(orig_shape[:-1] + (d,))


if __name__ == "__main__":
    key = jax.random.PRNGKey(0)
    kx, kw, kb, kx2 = jax.random.split(key, 4)

    batch, seq, in_features, n_embd = 2, 8, 4, 32  # Linear(4, n_embd)

    x = jax.random.normal(kx, (batch, seq, in_features), dtype=jnp.float32)

    # Deterministic nn.Linear-style parameters (uniform +/- 1/sqrt(fan_in)).
    bound = 1.0 / math.sqrt(in_features)
    weight = jax.random.uniform(kw, (n_embd, in_features), jnp.float32, -bound, bound)
    bias = jax.random.uniform(kb, (n_embd,), jnp.float32, -bound, bound)

    # bias=True path
    y = linear_projection(x, weight, bias)
    jax.block_until_ready(y)
    ref = jax.nn.gelu(x @ weight.T + bias, approximate=False)
    assert y.shape == ref.shape
    assert jnp.allclose(y, ref, atol=2e-5, rtol=2e-5), "mismatch vs reference (bias)"

    # bias=False path (config.bias = False)
    y_nb = linear_projection(x, weight, None)
    jax.block_until_ready(y_nb)
    ref_nb = jax.nn.gelu(x @ weight.T, approximate=False)
    assert jnp.allclose(y_nb, ref_nb, atol=2e-5, rtol=2e-5), "mismatch (no bias)"

    # Odd row count (exercises the pack-group padding path: n % G != 0).
    x_odd = jax.random.normal(kx2, (3, 7, in_features), dtype=jnp.float32)
    y_odd = linear_projection(x_odd, weight, bias)
    jax.block_until_ready(y_odd)
    ref_odd = jax.nn.gelu(x_odd @ weight.T + bias, approximate=False)
    assert jnp.allclose(y_odd, ref_odd, atol=2e-5, rtol=2e-5), "mismatch (odd rows)"

    print("KERNEL_OK")
</pallas_src>

<mosaic_0001>
module attributes {stable_mosaic.version = 11 : i64} {
  func.func @_linear_gelu_bias_kernel(%arg0: i32, %arg1: memref<8x16xf32, #tpu.memory_space<vmem>>, %arg2: memref<16x128xf32, #tpu.memory_space<vmem>>, %arg3: memref<1x128xf32, #tpu.memory_space<vmem>>, %arg4: memref<8x128xf32, #tpu.memory_space<vmem>>) attributes {dimension_semantics = [#tpu.dimension_semantics<parallel>], iteration_bounds = array<i64: 1>, scalar_prefetch = 0 : i64, scratch_operands = 0 : i64, tpu.core_type = #tpu.core_type<tc>, window_params = [{transform_indices = @transform_0, window_bounds = array<i64: 8, 16>}, {pipeline_mode = #tpu.pipeline_mode<synchronous>, transform_indices = @transform_1, window_bounds = array<i64: 16, 128>}, {pipeline_mode = #tpu.pipeline_mode<synchronous>, transform_indices = @transform_2, window_bounds = array<i64: 1, 128>}, {transform_indices = @transform_3, window_bounds = array<i64: 8, 128>}]} {
    %c0 = arith.constant 0 : index
    %c0_0 = arith.constant 0 : index
    %0 = vector.load %arg1[%c0, %c0_0] : memref<8x16xf32, #tpu.memory_space<vmem>>, vector<8x16xf32>
    %c0_1 = arith.constant 0 : index
    %c0_2 = arith.constant 0 : index
    %1 = vector.load %arg2[%c0_1, %c0_2] : memref<16x128xf32, #tpu.memory_space<vmem>>, vector<16x128xf32>
    %cst = arith.constant dense<0.000000e+00> : vector<8x128xf32>
    %2 = tpu.matmul %0, %1, %cst {dimension_numbers = #tpu.dot_dimension_numbers<[1], [0], [0], [1], [0, 0, 1, 1], [], []>} : vector<8x16xf32>, vector<16x128xf32>, vector<8x128xf32> -> vector<8x128xf32>
    %c0_3 = arith.constant 0 : index
    %c0_4 = arith.constant 0 : index
    %3 = vector.load %arg3[%c0_3, %c0_4] : memref<1x128xf32, #tpu.memory_space<vmem>>, vector<1x128xf32>
    %4 = vector.broadcast %3 : vector<1x128xf32> to vector<8x128xf32>
    %5 = arith.addf %2, %4 : vector<8x128xf32>
    %cst_5 = arith.constant 5.000000e-01 : f32
    %6 = vector.broadcast %cst_5 : f32 to vector<8x128xf32>
    %7 = arith.mulf %6, %5 : vector<8x128xf32>
    %cst_6 = arith.constant 0.707106769 : f32
    %8 = vector.broadcast %cst_6 : f32 to vector<8x128xf32>
    %9 = arith.mulf %5, %8 : vector<8x128xf32>
    %10 = math.erf %9 : vector<8x128xf32>
    %cst_7 = arith.constant 1.000000e+00 : f32
    %11 = vector.broadcast %cst_7 : f32 to vector<8x128xf32>
    %12 = arith.addf %11, %10 : vector<8x128xf32>
    %13 = arith.mulf %7, %12 : vector<8x128xf32>
    %c0_8 = arith.constant 0 : index
    %c0_9 = arith.constant 0 : index
    %14 = vector.load %arg4[%c0_8, %c0_9] : memref<8x128xf32, #tpu.memory_space<vmem>>, vector<8x128xf32>
    tpu.vector_store %arg4[%c0_8, %c0_9], %13 {strides = array<i32>} : memref<8x128xf32, #tpu.memory_space<vmem>>, vector<8x128xf32>,
    return
  }
  func.func @transform_0(%arg0: i32) -> (i32, i32) {
    %c0_i32 = arith.constant 0 : i32
    %c0_i32_0 = arith.constant 0 : i32
    return %arg0, %c0_i32 : i32, i32
  }
  func.func @transform_1(%arg0: i32) -> (i32, i32) {
    %c0_i32 = arith.constant 0 : i32
    %c0_i32_0 = arith.constant 0 : i32
    %c0_i32_1 = arith.constant 0 : i32
    return %c0_i32, %c0_i32_0 : i32, i32
  }
  func.func @transform_2(%arg0: i32) -> (i32, i32) {
    %c0_i32 = arith.constant 0 : i32
    %c0_i32_0 = arith.constant 0 : i32
    %c0_i32_1 = arith.constant 0 : i32
    return %c0_i32, %c0_i32_0 : i32, i32
  }
  func.func @transform_3(%arg0: i32) -> (i32, i32) {
    %c0_i32 = arith.constant 0 : i32
    %c0_i32_0 = arith.constant 0 : i32
    return %arg0, %c0_i32 : i32, i32
  }
}

</mosaic_0001>

<bundles_post_ra>
// kernel: tile.9
= control target key start
LH: loop header
LB: loop body
LE: loop exit
PB: predicated region body
PF: predicated region fallthrough
CT: control target
= control target key end

     0   :  { %vm7_vm0 = vcmask 261120   ;;  %s37_s8 = smov 32   ;;  %s38_s9 = smov 64   ;;  %vm13_vm1 = vcmask 1048320   ;;  %vm19_vm2 = vcmask 785920   ;;  %vm25_vm3 = vcmask 523520   ;;  %s55_s0 = inlined_call_operand.vmem [shape: f32[4,32], index: 0, kind: input, shape index: {}]   ;;  %s56_s1 = inlined_call_operand.vmem [shape: f32[1,128], index: 1, kind: output, shape index: {}]  }
   0x1   :  { %v4_v0 = vld [vmem:[%s55_s0] sm:$0xf]  ;;  %s36_s0 = smov 96  }
   0x2   :  { %5 = vst [vmem:[#allocation1] sm:$0xf] %v4_v0 }
   0x9   :  { %v10_v1 = vld [vmem:[#allocation1 + $0x3] sm:$0x1]   ;;  %v22_v2 = vld [vmem:[#allocation1 + $0x1] sm:$0x1]   ;;  %v6_v3 = vld [vmem:[#allocation1] sm:$0x1]  }
   0xa   :  { %11 = vrot.lane.b32.xlu0 %v10_v1, %s36_s0  ;;  %23 = vrot.lane.b32.xlu1 %v22_v2, %s37_s8  ;;  %v16_v4 = vld [vmem:[#allocation1 + $0x2] sm:$0x1]   ;;  %8 = vst.msk [vmem:[#allocation0] sm:$0x1] %vm7_vm0, %v6_v3  }
   0xe   :  { %17 = vrot.lane.b32.xlu0 %v16_v4, %s38_s9 }
  0x7c   :  { %v12_v5 = vpop.permute.xlu0 %11   ;;  %v24_v6 = vpop.permute.xlu1 %23  }
  0x7d   :  { %14 = vst.msk [vmem:[#allocation0] sm:$0x1] %vm13_vm1, %v12_v5  }
  0x80   :  { %v18_v7 = vpop.permute.xlu0 %17  }
  0x81   :  { %20 = vst.msk [vmem:[#allocation0] sm:$0x1] %vm19_vm2, %v18_v7  }
  0x82   :  { %26 = vst.msk [vmem:[#allocation0] sm:$0x1] %vm25_vm3, %v24_v6  }
  0x89   :  { %v30_v8 = vld [vmem:[#allocation0] sm:$0x1] }
  0x8a   :  { %32 = vst [vmem:[%s56_s1] sm:$0x1] %v30_v8 }

// kernel: tile.8
= control target key start
LH: loop header
LB: loop body
LE: loop exit
PB: predicated region body
PF: predicated region fallthrough
CT: control target
= control target key end

     0   :  { %s22_s0 = inlined_call_operand.vmem [shape: f32[32], index: 0, kind: input, shape index: {}]   ;;  %s23_s1 = inlined_call_operand.vmem [shape: f32[4,32], index: 1, kind: output, shape index: {}]  }
   0x1   :  { %v4_v0 = vld [vmem:[%s22_s0] ss:$0 sm:$0xff] }
   0x2   :  { %5 = vst [vmem:[%s23_s1] sm:$0xf] %v4_v0 }

// kernel: linear_projection.1
= control target key start
LH: loop header
LB: loop body
LE: loop exit
PB: predicated region body
PF: predicated region fallthrough
CT: control target
= control target key end

     0   :  { %v163_v2 = vmov 0.0|0.0   ;;  %vm164_vm0 = vmmov 0   ;;  %v165_v4 = vmov 0.0   ;;  %vm24_vm1 = vcmask 130048   ;;  %s201_s0 = inlined_call_operand.vmem [shape: f32[4,16], index: 0, kind: input, shape index: {}]   ;;  %s202_s1 = inlined_call_operand.vmem [shape: f32[16,128], index: 1, kind: input, shape index: {}]   ;;  %s203_s2 = inlined_call_operand.vmem [shape: f32[1,128], index: 2, kind: input, shape index: {}]   ;;  %s204_s3 = inlined_call_operand.vmem [shape: f32[4,128], index: 3, kind: output, shape index: {}]  }
   0x1   :  { %v15_v0 = vld [vmem:[%s202_s1] sm:$0xff]  ;;  %v16_v1 = vld [vmem:[%s202_s1 + $0x8] sm:$0xff]  ;;  %155 = vmatprep.subr.bf16.mxu0 %v163_v2  ;;  %152 = vmatprep.mubr.msk.f32.mxu0 %vm164_vm0, %v165_v4 }
   0x2   :  { %v156_v3 = vpack.c.bf16 %v16_v1, %v15_v0  ;;  %v14_v5 = vld [vmem:[%s201_s0] sm:$0xff] }
   0x3   :  { %v143_v6 = vld [vmem:[%s203_s2] ss:$0 sm:$0xff] }
   0x4   :  { %157 = vmatpush3.bf16.msra.mxu0 %v156_v3 }
   0x7   :  { %153 = vmatmul.mubr.msk.f32.vlgmr.msra.gmra.mrb[0].mxu0 %vm24_vm1, %v14_v5 }
  0xda   :  { %v94_v7 = vpop.f32.mrb[0].mxu0 }
  0xdb   :  { %v95_v8 = vadd.f32 %v143_v6, %v94_v7  ;;  %v154_v9 = vpop.f32.mrb[1].mxu0 }
  0xdd   :  { %v99_v10 = vmul.f32 0.70710677, %v95_v8  ;;  %v98_v12 = vmul.f32 0.5, %v95_v8 }
  0xdf   :  { %161 = verf.f32 %v99_v10 }
  0xe9   :  { %v162_v11 = vpop.eup %161 }
  0xea   :  { %v101_v13 = vadd.f32 1.0, %v162_v11 }
  0xec   :  { %v102_v14 = vmul.f32 %v101_v13, %v98_v12 }
  0xee   :  { %103 = vst [vmem:[#allocation2] sm:$0xff] %v102_v14 }
  0xf5   :  { %v121_v15 = vld [vmem:[#allocation2] sm:$0xf] }
  0xf6   :  { %122 = vst [vmem:[%s204_s3] sm:$0xf] %v121_v15 }

</bundles_post_ra>
